<compile_context>
chip_gen: v6e
topology: v6e:2x2x1
jax: 0.10.0
libtpu: 0.0.40
codegen_flags: <defaults>
</compile_context>

<pallas_src>
import functools

import jax
import jax.numpy as jnp
from jax.experimental import pallas as pl
from jax.experimental.pallas import tpu as pltpu


def temporal_model_kernel(x_ref, we_ref, be_ref, wfc_ref, bfc_ref, out_ref, *,
                          num_segments):
    # x:    (rows, Cin*HW) f32  -- rows = clips_per_block * T frame rows
    # we:   (Cin, D)       f32  -- stand-in backbone embed weight
    # be:   (1, D)         f32
    # wfc:  (D, Cpad)      bf16 -- new_fc weight, class dim zero-padded to 128
    # bfc:  (1, Cpad)      f32
    # out:  (cpb, Cpad)    f32  -- logits for this block's clips (lane-dense)
    rows, k = x_ref.shape
    cin, d = we_ref.shape
    hw = k // cin
    t = num_segments
    cpb = rows // t
    inv_hw = 1.0 / float(hw)
    inv_t = 1.0 / float(t)

    # TODO(synk): the real GST/C3D/S3D resnet backbone is an external module;
    # it is replaced by this stand-in: spatial GAP + linear embed + ReLU.
    def chan_gap(c):                                     # (rows, 1) f32
        chan = x_ref[:, c * hw:(c + 1) * hw]             # lane-aligned slice
        return jnp.sum(chan, axis=-1, keepdims=True) * inv_hw

    feats = chan_gap(0) * we_ref[0:1, :]                 # (rows, D) VPU FMA
    for c in range(1, cin):                              # unrolled, Cin tiny
        feats = feats + chan_gap(c) * we_ref[c:c + 1, :]
    feats = jnp.maximum(feats + be_ref[...], 0.0)        # ReLU
    # dropout(p=0.3) that replaced base_model.fc is identity at inference.

    # base_out.view(-1, T, C).mean(dim=1) commuted past the linear new_fc:
    # mean_t(new_fc(f_t)) == new_fc(mean_t(f_t)).  Rows are clip-major.
    pooled = jnp.sum(feats.reshape(cpb, t, d), axis=1) * inv_t   # (cpb, D)

    out_ref[...] = (
        jnp.dot(pooled.astype(jnp.bfloat16), wfc_ref[...],
                preferred_element_type=jnp.float32)
        + bfc_ref[...])


def _pick_clips_per_block(n, t, k, target_rows=256, max_x_block_bytes=8 << 20):
    """Clips per grid step: ~target_rows frame rows per block, with the f32 x
    block capped at ~8 MiB so double-buffered input fits v7x's 64 MiB VMEM."""
    rows_cap = max(t, min(target_rows, max_x_block_bytes // max(1, 4 * k)))
    clip_cap = max(1, rows_cap // t)
    divisors = [c for c in range(1, n + 1) if n % c == 0 and c <= clip_cap]
    # Prefer out blocks whose sublane dim is 8-aligned or covers the batch.
    aligned = [c for c in divisors if c == n or c % 8 == 0]
    return max(aligned) if aligned else max(divisors)


@functools.partial(jax.jit, static_argnames=("num_segments",))
def temporal_model_forward(x, params, num_segments):
    """x: (N*T, 3, H, W) float32, same layout as the PyTorch module input."""
    we, be, wf, bf = params
    NT, Cin, H, W = x.shape
    T = int(num_segments)
    assert NT % T == 0
    N = NT // T
    HW = H * W
    K = Cin * HW
    D = we.shape[1]
    C = wf.shape[1]
    C_pad = ((C + 127) // 128) * 128      # lane-dense output (unmasked vst)

    # `view(-1, T, 3, H, W).transpose(1, 2)` followed by the per-frame
    # backbone's flatten composes to the identity on frame-major rows, so
    # consume x as (N*T, Cin*H*W) f32 directly (no transpose copy and no
    # bf16 round trip through HBM).
    x2 = x.reshape(NT, K)

    # Weight prep is tiny (D x 128) and static; under jit it runs once.
    wf_pad = jnp.zeros((D, C_pad), jnp.bfloat16).at[:, :C].set(
        wf.astype(jnp.bfloat16))
    bf_pad = jnp.zeros((1, C_pad), jnp.float32).at[:, :C].set(bf)

    cpb = _pick_clips_per_block(N, T, K)
    rows = cpb * T
    num_blocks = N // cpb
    # TODO(synk): for very large K (e.g. 224x224 inputs) add a K grid axis
    # with partial-GAP accumulation instead of shrinking the row block.

    # VMEM: double-buffered x block + resident weights + out block + headroom.
    vmem_budget = (2 * (rows * K * 4 + Cin * D * 4 + D * 4 + D * C_pad * 2
                        + C_pad * 4 + cpb * C_pad * 4)
                   + 4 * rows * D * 4 + (2 << 20))
    vmem_budget = max(16 << 20, min(vmem_budget, 48 << 20))

    cost = pl.CostEstimate(
        flops=NT * K + 2 * NT * Cin * D + 2 * NT * D + 2 * N * D * C_pad,
        transcendentals=0,
        bytes_accessed=(x2.size * 4 + Cin * D * 4 + D * 4 + D * C_pad * 2
                        + C_pad * 4 + N * C_pad * 4),
    )

    out_pad = pl.pallas_call(
        functools.partial(temporal_model_kernel, num_segments=T),
        out_shape=jax.ShapeDtypeStruct((N, C_pad), jnp.float32),
        grid=(num_blocks,),
        in_specs=[
            pl.BlockSpec((rows, K), lambda b: (b, 0)),         # frame rows
            pl.BlockSpec((Cin, D), lambda b: (0, 0)),          # resident
            pl.BlockSpec((1, D), lambda b: (0, 0)),
            pl.BlockSpec((D, C_pad), lambda b: (0, 0)),
            pl.BlockSpec((1, C_pad), lambda b: (0, 0)),
        ],
        out_specs=pl.BlockSpec((cpb, C_pad), lambda b: (b, 0)),
        compiler_params=pltpu.CompilerParams(
            dimension_semantics=("parallel",),
            vmem_limit_bytes=int(vmem_budget),
        ),
        cost_estimate=cost,
    )(x2, we, be, wf_pad, bf_pad)

    return out_pad[:, :C]


def init_params(key, num_class, feature_dim=512, in_channels=3):
    k_embed, k_fc = jax.random.split(key)
    # stand-in backbone embed (deterministic synthetic weights)
    we = jax.random.normal(k_embed, (in_channels, feature_dim), jnp.float32) * 0.02
    be = jnp.zeros((1, feature_dim), jnp.float32)
    # new_fc: normal_(w, 0, 0.001), constant_(b, 0) -- as in TemporalModel.__init__
    wf = jax.random.normal(k_fc, (feature_dim, num_class), jnp.float32) * 0.001
    bf = jnp.zeros((1, num_class), jnp.float32)
    return we, be, wf, bf


def reference_forward(x, params, num_segments):
    """Pure-JAX f32 reference of the module math (fc then mean over segments)."""
    we, be, wf, bf = params
    NT, Cin, H, W = x.shape
    N = NT // num_segments
    gap = x.reshape(NT, Cin, H * W).mean(axis=-1)
    feats = jnp.maximum(gap @ we + be, 0.0)
    logits = feats @ wf + bf
    return logits.reshape(N, num_segments, -1).mean(axis=1)


if __name__ == "__main__":
    num_segments = 8
    num_class = 16
    feature_dim = 512      # resnet18/34 branch of _prepare_base_model
    batch = 2
    H = W = 16             # small spatial size for the synthetic test

    key = jax.random.PRNGKey(0)
    k_x, k_p = jax.random.split(key)
    x = jax.random.normal(k_x, (batch * num_segments, 3, H, W), jnp.float32)
    params = init_params(k_p, num_class, feature_dim)

    out = temporal_model_forward(x, params, num_segments=num_segments)
    out = jax.block_until_ready(out)

    ref = reference_forward(x, params, num_segments)
    assert out.shape == (batch, num_class)
    # f32 everywhere except the tiny bf16 new_fc matmul; compare relative to
    # the logit scale (logits are ~1e-5 because new_fc std is 0.001).
    err = float(jnp.max(jnp.abs(out - ref)))
    scale = float(jnp.max(jnp.abs(ref)))
    assert err <= 5e-2 * scale + 5e-7, (err, scale)
    print("KERNEL_OK")
</pallas_src>

<mosaic_0001>
module attributes {stable_mosaic.version = 11 : i64} {
  func.func @temporal_model_kernel(%arg0: i32, %arg1: memref<16x768xf32, #tpu.memory_space<vmem>>, %arg2: memref<3x512xf32, #tpu.memory_space<vmem>>, %arg3: memref<1x512xf32, #tpu.memory_space<vmem>>, %arg4: memref<512x128xbf16, #tpu.memory_space<vmem>>, %arg5: memref<1x128xf32, #tpu.memory_space<vmem>>, %arg6: memref<2x128xf32, #tpu.memory_space<vmem>>) attributes {dimension_semantics = [#tpu.dimension_semantics<parallel>], iteration_bounds = array<i64: 1>, scalar_prefetch = 0 : i64, scratch_operands = 0 : i64, tpu.core_type = #tpu.core_type<tc>, window_params = [{transform_indices = @transform_0, window_bounds = array<i64: 16, 768>}, {pipeline_mode = #tpu.pipeline_mode<synchronous>, transform_indices = @transform_1, window_bounds = array<i64: 3, 512>}, {pipeline_mode = #tpu.pipeline_mode<synchronous>, transform_indices = @transform_2, window_bounds = array<i64: 1, 512>}, {pipeline_mode = #tpu.pipeline_mode<synchronous>, transform_indices = @transform_3, window_bounds = array<i64: 512, 128>}, {pipeline_mode = #tpu.pipeline_mode<synchronous>, transform_indices = @transform_4, window_bounds = array<i64: 1, 128>}, {transform_indices = @transform_5, window_bounds = array<i64: 2, 128>}]} {
    %c0 = arith.constant 0 : index
    %c0_0 = arith.constant 0 : index
    %0 = vector.load %arg1[%c0, %c0_0] : memref<16x768xf32, #tpu.memory_space<vmem>>, vector<16x256xf32>
    %cst = arith.constant dense<0.000000e+00> : vector<16xf32>
    %1 = vector.multi_reduction <add>, %0, %cst [1] : vector<16x256xf32> to vector<16xf32>
    %2 = vector.shape_cast %1 : vector<16xf32> to vector<16x1xf32>
    %cst_1 = arith.constant 3.906250e-03 : f32
    %3 = vector.broadcast %cst_1 : f32 to vector<16x1xf32>
    %4 = arith.mulf %2, %3 : vector<16x1xf32>
    %c0_2 = arith.constant 0 : index
    %c0_3 = arith.constant 0 : index
    %5 = vector.load %arg2[%c0_2, %c0_3] : memref<3x512xf32, #tpu.memory_space<vmem>>, vector<1x512xf32>
    %6 = vector.broadcast %4 : vector<16x1xf32> to vector<16x512xf32>
    %7 = vector.broadcast %5 : vector<1x512xf32> to vector<16x512xf32>
    %8 = arith.mulf %6, %7 : vector<16x512xf32>
    %c0_4 = arith.constant 0 : index
    %c256 = arith.constant 256 : index
    %9 = vector.load %arg1[%c0_4, %c256] : memref<16x768xf32, #tpu.memory_space<vmem>>, vector<16x256xf32>
    %cst_5 = arith.constant dense<0.000000e+00> : vector<16xf32>
    %10 = vector.multi_reduction <add>, %9, %cst_5 [1] : vector<16x256xf32> to vector<16xf32>
    %11 = vector.shape_cast %10 : vector<16xf32> to vector<16x1xf32>
    %cst_6 = arith.constant 3.906250e-03 : f32
    %12 = vector.broadcast %cst_6 : f32 to vector<16x1xf32>
    %13 = arith.mulf %11, %12 : vector<16x1xf32>
    %c1 = arith.constant 1 : index
    %c0_7 = arith.constant 0 : index
    %14 = vector.load %arg2[%c1, %c0_7] : memref<3x512xf32, #tpu.memory_space<vmem>>, vector<1x512xf32>
    %15 = vector.broadcast %13 : vector<16x1xf32> to vector<16x512xf32>
    %16 = vector.broadcast %14 : vector<1x512xf32> to vector<16x512xf32>
    %17 = arith.mulf %15, %16 : vector<16x512xf32>
    %18 = arith.addf %8, %17 : vector<16x512xf32>
    %c0_8 = arith.constant 0 : index
    %c512 = arith.constant 512 : index
    %19 = vector.load %arg1[%c0_8, %c512] : memref<16x768xf32, #tpu.memory_space<vmem>>, vector<16x256xf32>
    %cst_9 = arith.constant dense<0.000000e+00> : vector<16xf32>
    %20 = vector.multi_reduction <add>, %19, %cst_9 [1] : vector<16x256xf32> to vector<16xf32>
    %21 = vector.shape_cast %20 : vector<16xf32> to vector<16x1xf32>
    %cst_10 = arith.constant 3.906250e-03 : f32
    %22 = vector.broadcast %cst_10 : f32 to vector<16x1xf32>
    %23 = arith.mulf %21, %22 : vector<16x1xf32>
    %c2 = arith.constant 2 : index
    %c0_11 = arith.constant 0 : index
    %24 = vector.load %arg2[%c2, %c0_11] : memref<3x512xf32, #tpu.memory_space<vmem>>, vector<1x512xf32>
    %25 = vector.broadcast %23 : vector<16x1xf32> to vector<16x512xf32>
    %26 = vector.broadcast %24 : vector<1x512xf32> to vector<16x512xf32>
    %27 = arith.mulf %25, %26 : vector<16x512xf32>
    %28 = arith.addf %18, %27 : vector<16x512xf32>
    %c0_12 = arith.constant 0 : index
    %c0_13 = arith.constant 0 : index
    %29 = vector.load %arg3[%c0_12, %c0_13] : memref<1x512xf32, #tpu.memory_space<vmem>>, vector<1x512xf32>
    %30 = vector.broadcast %29 : vector<1x512xf32> to vector<16x512xf32>
    %31 = arith.addf %28, %30 : vector<16x512xf32>
    %cst_14 = arith.constant 0.000000e+00 : f32
    %32 = vector.broadcast %cst_14 : f32 to vector<16x512xf32>
    %33 = arith.maximumf %31, %32 : vector<16x512xf32>
    %34 = vector.shape_cast %33 : vector<16x512xf32> to vector<2x8x512xf32>
    %cst_15 = arith.constant dense<0.000000e+00> : vector<2x512xf32>
    %35 = vector.multi_reduction <add>, %34, %cst_15 [1] : vector<2x8x512xf32> to vector<2x512xf32>
    %cst_16 = arith.constant 1.250000e-01 : f32
    %36 = vector.broadcast %cst_16 : f32 to vector<2x512xf32>
    %37 = arith.mulf %35, %36 : vector<2x512xf32>
    %38 = arith.truncf %37 : vector<2x512xf32> to vector<2x512xbf16>
    %c0_17 = arith.constant 0 : index
    %c0_18 = arith.constant 0 : index
    %39 = vector.load %arg4[%c0_17, %c0_18] : memref<512x128xbf16, #tpu.memory_space<vmem>>, vector<512x128xbf16>
    %cst_19 = arith.constant dense<0.000000e+00> : vector<2x128xf32>
    %40 = tpu.matmul %38, %39, %cst_19 {dimension_numbers = #tpu.dot_dimension_numbers<[1], [0], [0], [1], [0, 0, 1, 1], [], []>} : vector<2x512xbf16>, vector<512x128xbf16>, vector<2x128xf32> -> vector<2x128xf32>
    %c0_20 = arith.constant 0 : index
    %c0_21 = arith.constant 0 : index
    %41 = vector.load %arg5[%c0_20, %c0_21] : memref<1x128xf32, #tpu.memory_space<vmem>>, vector<1x128xf32>
    %42 = vector.broadcast %41 : vector<1x128xf32> to vector<2x128xf32>
    %43 = arith.addf %40, %42 : vector<2x128xf32>
    %c0_22 = arith.constant 0 : index
    %c0_23 = arith.constant 0 : index
    %44 = vector.load %arg6[%c0_22, %c0_23] : memref<2x128xf32, #tpu.memory_space<vmem>>, vector<2x128xf32>
    tpu.vector_store %arg6[%c0_22, %c0_23], %43 {strides = array<i32>} : memref<2x128xf32, #tpu.memory_space<vmem>>, vector<2x128xf32>,
    return
  }
  func.func @transform_0(%arg0: i32) -> (i32, i32) {
    %c0_i32 = arith.constant 0 : i32
    %c0_i32_0 = arith.constant 0 : i32
    return %arg0, %c0_i32 : i32, i32
  }
  func.func @transform_1(%arg0: i32) -> (i32, i32) {
    %c0_i32 = arith.constant 0 : i32
    %c0_i32_0 = arith.constant 0 : i32
    %c0_i32_1 = arith.constant 0 : i32
    return %c0_i32, %c0_i32_0 : i32, i32
  }
  func.func @transform_2(%arg0: i32) -> (i32, i32) {
    %c0_i32 = arith.constant 0 : i32
    %c0_i32_0 = arith.constant 0 : i32
    %c0_i32_1 = arith.constant 0 : i32
    return %c0_i32, %c0_i32_0 : i32, i32
  }
  func.func @transform_3(%arg0: i32) -> (i32, i32) {
    %c0_i32 = arith.constant 0 : i32
    %c0_i32_0 = arith.constant 0 : i32
    %c0_i32_1 = arith.constant 0 : i32
    return %c0_i32, %c0_i32_0 : i32, i32
  }
  func.func @transform_4(%arg0: i32) -> (i32, i32) {
    %c0_i32 = arith.constant 0 : i32
    %c0_i32_0 = arith.constant 0 : i32
    %c0_i32_1 = arith.constant 0 : i32
    return %c0_i32, %c0_i32_0 : i32, i32
  }
  func.func @transform_5(%arg0: i32) -> (i32, i32) {
    %c0_i32 = arith.constant 0 : i32
    %c0_i32_0 = arith.constant 0 : i32
    return %arg0, %c0_i32 : i32, i32
  }
}

</mosaic_0001>

<bundles_post_ra>
// kernel: temporal_model_forward.1
= control target key start
LH: loop header
LB: loop body
LE: loop exit
PB: predicated region body
PF: predicated region fallthrough
CT: control target
= control target key end

     0   :  { %s970_s0 = inlined_call_operand.vmem [shape: f32[16,768], index: 0, kind: input, shape index: {}]   ;;  %s971_s1 = inlined_call_operand.vmem [shape: f32[3,512], index: 1, kind: input, shape index: {}]   ;;  %s972_s2 = inlined_call_operand.vmem [shape: f32[1,512], index: 2, kind: input, shape index: {}]   ;;  %s973_s3 = inlined_call_operand.vmem [shape: bf16[512,128], index: 3, kind: input, shape index: {}]   ;;  %s974_s4 = inlined_call_operand.vmem [shape: f32[1,128], index: 4, kind: input, shape index: {}]   ;;  %s975_s5 = inlined_call_operand.hbm [shape: f32[2,128], index: 5, kind: output, shape index: {}]  }
   0x1   :  { %v64_v0 = vld [vmem:[%s970_s0 + $0x10] sm:$0xff]  ;;  %v65_v1 = vld [vmem:[%s970_s0 + $0x18] sm:$0xff]  ;;  %v22_v2 = vld [vmem:[%s970_s0] sm:$0xff] }
   0x2   :  { %v68_v3 = vadd.f32 %v65_v1, %v64_v0  ;;  %v23_v4 = vld [vmem:[%s970_s0 + $0x8] sm:$0xff]  ;;  %v66_v5 = vld [vmem:[%s970_s0 + $0x40] sm:$0xff]  ;;  %v24_v8 = vld [vmem:[%s970_s0 + $0x30] sm:$0xff] }
   0x3   :  { %v67_v6 = vld [vmem:[%s970_s0 + $0x48] sm:$0xff]  ;;  %v26_v7 = vadd.f32 %v23_v4, %v22_v2  ;;  %v25_v9 = vld [vmem:[%s970_s0 + $0x38] sm:$0xff]  ;;  %v117_v11 = vld [vmem:[%s970_s0 + $0x50] sm:$0xff] }
   0x4   :  { %69 = vadd.xlane.f32.xlu1 %v68_v3  ;;  %v71_v10 = vadd.f32 %v67_v6, %v66_v5  ;;  %v118_v12 = vld [vmem:[%s970_s0 + $0x58] sm:$0xff]  ;;  %v29_v13 = vadd.f32 %v25_v9, %v24_v8  ;;  %v115_v14 = vld [vmem:[%s970_s0 + $0x20] sm:$0xff]  ;;  %v116_v15 = vld [vmem:[%s970_s0 + $0x28] sm:$0xff] }
   0x5   :  { %27 = vadd.xlane.f32.xlu0 %v26_v7  ;;  %v122_v16 = vadd.f32 %v118_v12, %v117_v11  ;;  %v119_v17 = vadd.f32 %v116_v15, %v115_v14  ;;  %v735_v18 = vld [vmem:[%s973_s3 + $0x78] sm:$0xff]   ;;  %v739_v22 = vld [vmem:[%s973_s3 + $0x70] sm:$0xff]   ;;  %v743_v26 = vld [vmem:[%s973_s3 + $0x68] sm:$0xff]  }
   0x6   :  { %v736_v19 = vld [vmem:[%s973_s3 + $0xf8] sm:$0xff]   ;;  %690 = vmatprep.subr.bf16.mxu0 %v735_v18  ;;  %v740_v23 = vld [vmem:[%s973_s3 + $0xf0] sm:$0xff]   ;;  %v744_v27 = vld [vmem:[%s973_s3 + $0xe8] sm:$0xff]  }
   0x7   :  { %v737_v20 = vld [vmem:[%s973_s3 + $0x38] sm:$0xff]   ;;  %712 = vmatprep.subr.bf16.mxu1 %v736_v19  ;;  %v741_v24 = vld [vmem:[%s973_s3 + $0x30] sm:$0xff]  }
   0x8   :  { %72 = vadd.xlane.f32.xlu1 %v71_v10  ;;  %v738_v21 = vld [vmem:[%s973_s3 + $0xb8] sm:$0xff]   ;;  %691 = vmatpush3.bf16.msra.mxu0 %v737_v20  ;;  %v742_v25 = vld [vmem:[%s973_s3 + $0xb0] sm:$0xff]  }
   0x9   :  { %30 = vadd.xlane.f32.xlu0 %v29_v13  ;;  %713 = vmatpush3.bf16.msra.mxu1 %v738_v21 }
   0xa   :  { %692 = vmatprep.subr.bf16.mxu0 %v739_v22  ;;  %714 = vmatprep.subr.bf16.mxu1 %v740_v23 }
   0xc   :  { %123 = vadd.xlane.f32.xlu1 %v122_v16  ;;  %693 = vmatpush3.bf16.msra.mxu0 %v741_v24 }
   0xd   :  { %120 = vadd.xlane.f32.xlu0 %v119_v17  ;;  %715 = vmatpush3.bf16.msra.mxu1 %v742_v25 }
   0xe   :  { %10 = vsyncpa [#allocation3], 0  ;;  %v745_v28 = vld [vmem:[%s973_s3 + $0x28] sm:$0xff]   ;;  %694 = vmatprep.subr.bf16.mxu0 %v743_v26  ;;  %716 = vmatprep.subr.bf16.mxu1 %v744_v27  ;;  %v747_v30 = vld [vmem:[%s973_s3 + $0x60] sm:$0xff]   ;;  %v36_v50 = vlaneseq  ;;  %vm355_vm0 = vcmask 1041409   ;;  %s789_s10 = smov [#allocation2]  }
   0xf   :  { %v746_v29 = vld [vmem:[%s973_s3 + $0xa8] sm:$0xff]   ;;  %v748_v31 = vld [vmem:[%s973_s3 + $0xe0] sm:$0xff]   ;;  %v751_v34 = vld [vmem:[%s973_s3 + $0x58] sm:$0xff]   ;;  %s647_s11 = sshll.u32 %s789_s10, 4  ;;  %s648_s11 = int_to_ptr.vmem [resolvable:$true] %s647_s11 }
  0x10   :  { %695 = vmatpush3.bf16.msra.mxu0 %v745_v28  ;;  %v749_v32 = vld [vmem:[%s973_s3 + $0x20] sm:$0xff]   ;;  %v752_v35 = vld [vmem:[%s973_s3 + $0xd8] sm:$0xff]   ;;  %v755_v38 = vld [vmem:[%s973_s3 + $0x50] sm:$0xff]   ;;  %v37_v51 = vshrl.u32 %v36_v50, 7  ;;  %s767_s12 = scalar_lea.vmem %s648_s11, 32  ;;  %p772_p1 = scmp.lt.s32.totalorder %s648_s11, %s648_s11 }
  0x11   :  { %717 = vmatpush3.bf16.msra.mxu1 %v746_v29  ;;  %v750_v33 = vld [vmem:[%s973_s3 + $0xa0] sm:$0xff]   ;;  %696 = vmatprep.subr.bf16.mxu0 %v747_v30  ;;  %v753_v36 = vld [vmem:[%s973_s3 + $0x18] sm:$0xff]   ;;  %v756_v39 = vld [vmem:[%s973_s3 + $0xd0] sm:$0xff]   ;;  %p768_p0 = scmp.ne.s32.totalorder %s648_s11, %s767_s12  ;;  %p773_p2 = scmp.lt.s32.totalorder %s767_s12, %s767_s12 }
  0x12   :  { %718 = vmatprep.subr.bf16.mxu1 %v748_v31  ;;  %v754_v37 = vld [vmem:[%s973_s3 + $0x98] sm:$0xff]   ;;  %v757_v40 = vld [vmem:[%s973_s3 + $0x10] sm:$0xff]   ;;  %v759_v42 = vld [vmem:[%s973_s3 + $0x48] sm:$0xff]   ;;  %v38_v53 = vsub.s32 0, %v37_v51  ;;  %v42_v54 = vsub.s32 1, %v37_v51  ;;  %v46_v55 = vsub.s32 2, %v37_v51 }
  0x13   :  { %v758_v41 = vld [vmem:[%s973_s3 + $0x90] sm:$0xff]   ;;  %v760_v43 = vld [vmem:[%s973_s3 + $0xc8] sm:$0xff]   ;;  %v763_v46 = vld [vmem:[%s973_s3 + $0x40] sm:$0xff]   ;;  %v50_v57 = vsub.s32 3, %v37_v51  ;;  %p774_p3 = por %p773_p2, %p772_p1 }
  0x14   :  { %697 = vmatpush3.bf16.msra.mxu0 %v749_v32  ;;  %v761_v44 = vld [vmem:[%s973_s3 + $0x8] sm:$0xff]   ;;  %v764_v47 = vld [vmem:[%s973_s3 + $0xc0] sm:$0xff]  }
  0x15   :  { %719 = vmatpush3.bf16.msra.mxu1 %v750_v33  ;;  %698 = vmatprep.subr.bf16.mxu0 %v751_v34  ;;  %v762_v45 = vld [vmem:[%s973_s3 + $0x88] sm:$0xff]   ;;  %v765_v48 = vld [vmem:[%s973_s3] sm:$0xff]   ;;  %p775_p4 = pnand %p774_p3, %p768_p0 }
  0x16   :  { %720 = vmatprep.subr.bf16.mxu1 %v752_v35  ;;  %v766_v49 = vld [vmem:[%s973_s3 + $0x80] sm:$0xff]  }
  0x17   :  { %v655_v52 = vld [vmem:[%s971_s1 + $0x1] ss:$4 sm:$0xf]  ;;  %v34_v56 = vld [vmem:[%s971_s1] ss:$4 sm:$0xf] }
  0x18   :  { %699 = vmatpush3.bf16.msra.mxu0 %v753_v36  ;;  %v82_v60 = vrot.slane %v655_v52, %v38_v53  ;;  %v39_v61 = vrot.slane %v34_v56, %v38_v53  ;;  %v656_v63 = vld [vmem:[%s971_s1 + $0x2] ss:$4 sm:$0xf]  ;;  %v86_v0 = vrot.slane %v655_v52, %v42_v54  ;;  %v90_v1 = vrot.slane %v655_v52, %v46_v55 }
  0x19   :  { %721 = vmatpush3.bf16.msra.mxu1 %v754_v37  ;;  %700 = vmatprep.subr.bf16.mxu0 %v755_v38  ;;  %v166_v3 = vld [vmem:[%s972_s2] sm:$0xf]  ;;  %v94_v4 = vrot.slane %v655_v52, %v50_v57  ;;  %v43_v5 = vrot.slane %v34_v56, %v42_v54  ;;  %v47_v6 = vrot.slane %v34_v56, %v46_v55 }
  0x1a   :  { %722 = vmatprep.subr.bf16.mxu1 %v756_v39  ;;  %v51_v7 = vrot.slane %v34_v56, %v50_v57  ;;  %v133_v9 = vrot.slane %v656_v63, %v38_v53  ;;  %v137_v10 = vrot.slane %v656_v63, %v42_v54  ;;  %v141_v11 = vrot.slane %v656_v63, %v46_v55 }
  0x1b   :  { %v145_v12 = vrot.slane %v656_v63, %v50_v57  ;;  %v171_v17 = vrot.slane %v166_v3, %v38_v53  ;;  %v175_v19 = vrot.slane %v166_v3, %v42_v54  ;;  %v179_v20 = vrot.slane %v166_v3, %v46_v55 }
  0x1c   :  { %701 = vmatpush3.bf16.msra.mxu0 %v757_v40  ;;  %v183_v21 = vrot.slane %v166_v3, %v50_v57 }
  0x1d   :  { %723 = vmatpush3.bf16.msra.mxu1 %v758_v41  ;;  %702 = vmatprep.subr.bf16.mxu0 %v759_v42 }
  0x1e   :  { %724 = vmatprep.subr.bf16.mxu1 %v760_v43 }
  0x20   :  { %703 = vmatpush3.bf16.msra.mxu0 %v761_v44 }
  0x21   :  { %725 = vmatpush3.bf16.msra.mxu1 %v762_v45  ;;  %704 = vmatprep.subr.bf16.mxu0 %v763_v46 }
  0x22   :  { %726 = vmatprep.subr.bf16.mxu1 %v764_v47 }
  0x24   :  { %705 = vmatpush3.bf16.msra.mxu0 %v765_v48 }
  0x25   :  { %727 = vmatpush3.bf16.msra.mxu1 %v766_v49 }
  0x8d   :  { %v70_v58 = vpop.xlane.xlu1 %69 }
  0x8e   :  { %v74_v59 = vmul.f32 0.00390625, %v70_v58  ;;  %v28_v62 = vpop.xlane.xlu0 %27 }
  0x8f   :  { %v32_v2 = vmul.f32 0.00390625, %v28_v62 }
  0x90   :  { %v99_v13 = vmul.f32 %v82_v60, %v74_v59  ;;  %v100_v18 = vmul.f32 %v86_v0, %v74_v59  ;;  %v101_v22 = vmul.f32 %v90_v1, %v74_v59  ;;  %v102_v23 = vmul.f32 %v94_v4, %v74_v59 }
  0x91   :  { %v73_v8 = vpop.xlane.xlu1 %72  ;;  %v56_v14 = vmul.f32 %v39_v61, %v32_v2  ;;  %v57_v24 = vmul.f32 %v43_v5, %v32_v2  ;;  %v58_v31 = vmul.f32 %v47_v6, %v32_v2  ;;  %v59_v32 = vmul.f32 %v51_v7, %v32_v2 }
  0x92   :  { %v75_v15 = vmul.f32 0.00390625, %v73_v8  ;;  %v31_v16 = vpop.xlane.xlu0 %30 }
  0x93   :  { %v33_v29 = vmul.f32 0.00390625, %v31_v16  ;;  %v107_v33 = vadd.f32 %v99_v13, %v56_v14  ;;  %v108_v48 = vadd.f32 %v100_v18, %v57_v24  ;;  %v109_v49 = vadd.f32 %v101_v22, %v58_v31 }
  0x94   :  { %v103_v25 = vmul.f32 %v82_v60, %v75_v15  ;;  %v104_v26 = vmul.f32 %v86_v0, %v75_v15  ;;  %v105_v27 = vmul.f32 %v90_v1, %v75_v15  ;;  %v106_v28 = vmul.f32 %v94_v4, %v75_v15 }
  0x95   :  { %v124_v30 = vpop.xlane.xlu1 %123  ;;  %v60_v35 = vmul.f32 %v39_v61, %v33_v29  ;;  %v61_v36 = vmul.f32 %v43_v5, %v33_v29  ;;  %v62_v37 = vmul.f32 %v47_v6, %v33_v29  ;;  %v63_v38 = vmul.f32 %v51_v7, %v33_v29 }
  0x96   :  { %v126_v34 = vmul.f32 0.00390625, %v124_v30  ;;  %v121_v39 = vpop.xlane.xlu0 %120  ;;  %v110_v50 = vadd.f32 %v102_v23, %v59_v32 }
  0x97   :  { %v111_v44 = vadd.f32 %v103_v25, %v60_v35  ;;  %v112_v45 = vadd.f32 %v104_v26, %v61_v36  ;;  %v113_v46 = vadd.f32 %v105_v27, %v62_v37  ;;  %v114_v47 = vadd.f32 %v106_v28, %v63_v38 }
  0x98   :  { %v154_v40 = vmul.f32 %v133_v9, %v126_v34  ;;  %v155_v41 = vmul.f32 %v137_v10, %v126_v34  ;;  %v156_v42 = vmul.f32 %v141_v11, %v126_v34  ;;  %v157_v43 = vmul.f32 %v145_v12, %v126_v34 }
  0x99   :  { %v125_v51 = vmul.f32 0.00390625, %v121_v39 }
  0x9a   :  { %v162_v52 = vadd.f32 %v154_v40, %v111_v44  ;;  %v163_v53 = vadd.f32 %v155_v41, %v112_v45  ;;  %v164_v54 = vadd.f32 %v156_v42, %v113_v46  ;;  %v165_v55 = vadd.f32 %v157_v43, %v114_v47 }
  0x9b   :  { %v150_v56 = vmul.f32 %v133_v9, %v125_v51  ;;  %v151_v57 = vmul.f32 %v137_v10, %v125_v51  ;;  %v152_v58 = vmul.f32 %v141_v11, %v125_v51  ;;  %v153_v59 = vmul.f32 %v145_v12, %v125_v51 }
  0x9c   :  { %v192_v60 = vadd.f32 %v171_v17, %v162_v52  ;;  %v193_v61 = vadd.f32 %v175_v19, %v163_v53  ;;  %v194_v62 = vadd.f32 %v179_v20, %v164_v54  ;;  %v195_v63 = vadd.f32 %v183_v21, %v165_v55 }
  0x9d   :  { %v158_v0 = vadd.f32 %v150_v56, %v107_v33  ;;  %v159_v1 = vadd.f32 %v151_v57, %v108_v48  ;;  %v160_v2 = vadd.f32 %v152_v58, %v109_v49  ;;  %v161_v3 = vadd.f32 %v153_v59, %v110_v50 }
  0x9e   :  { %v200_v4 = vmax.f32 %v192_v60, 0.0  ;;  %v202_v5 = vmax.f32 %v194_v62, 0.0  ;;  %v201_v6 = vmax.f32 %v193_v61, 0.0  ;;  %v203_v7 = vmax.f32 %v195_v63, 0.0 }
  0x9f   :  { %v188_v8 = vadd.f32 %v171_v17, %v158_v0  ;;  %v189_v13 = vadd.f32 %v175_v19, %v159_v1  ;;  %v190_v14 = vadd.f32 %v179_v20, %v160_v2  ;;  %v191_v15 = vadd.f32 %v183_v21, %v161_v3 }
  0xa0   :  { %v228_v9 = vrot.slane %v200_v4, 4  ;;  %v240_v10 = vrot.slane %v202_v5, 4  ;;  %v234_v11 = vrot.slane %v201_v6, 4  ;;  %v246_v12 = vrot.slane %v203_v7, 4 }
  0xa1   :  { %v196_v16 = vmax.f32 %v188_v8, 0.0  ;;  %v198_v18 = vmax.f32 %v190_v14, 0.0  ;;  %v197_v22 = vmax.f32 %v189_v13, 0.0  ;;  %v199_v23 = vmax.f32 %v191_v15, 0.0 }
  0xa2   :  { %v235_v24 = vadd.f32 %v234_v11, %v201_v6  ;;  %v247_v25 = vadd.f32 %v246_v12, %v203_v7  ;;  %v229_v26 = vadd.f32 %v228_v9, %v200_v4  ;;  %v241_v27 = vadd.f32 %v240_v10, %v202_v5 }
  0xa3   :  { %v204_v28 = vrot.slane %v196_v16, 4  ;;  %v216_v29 = vrot.slane %v198_v18, 4  ;;  %v210_v30 = vrot.slane %v197_v22, 4  ;;  %v222_v31 = vrot.slane %v199_v23, 4 }
  0xa4   :  { %v236_v17 = vrot.slane %v235_v24, 2  ;;  %v248_v19 = vrot.slane %v247_v25, 2  ;;  %v230_v20 = vrot.slane %v229_v26, 2  ;;  %v242_v21 = vrot.slane %v241_v27, 2 }
  0xa5   :  { %v211_v32 = vadd.f32 %v210_v30, %v197_v22  ;;  %v223_v33 = vadd.f32 %v222_v31, %v199_v23  ;;  %v205_v34 = vadd.f32 %v204_v28, %v196_v16  ;;  %v217_v35 = vadd.f32 %v216_v29, %v198_v18 }
  0xa6   :  { %v237_v36 = vadd.f32 %v236_v17, %v235_v24  ;;  %v249_v37 = vadd.f32 %v248_v19, %v247_v25  ;;  %v231_v38 = vadd.f32 %v230_v20, %v229_v26  ;;  %v243_v39 = vadd.f32 %v242_v21, %v241_v27 }
  0xa7   :  { %v212_v40 = vrot.slane %v211_v32, 2  ;;  %v224_v41 = vrot.slane %v223_v33, 2  ;;  %v206_v42 = vrot.slane %v205_v34, 2  ;;  %v218_v43 = vrot.slane %v217_v35, 2 }
  0xa8   :  { %v238_v44 = vrot.slane %v237_v36, 1  ;;  %v250_v45 = vrot.slane %v249_v37, 1  ;;  %v232_v46 = vrot.slane %v231_v38, 1  ;;  %v244_v47 = vrot.slane %v243_v39, 1 }
  0xa9   :  { %v213_v48 = vadd.f32 %v212_v40, %v211_v32  ;;  %v225_v49 = vadd.f32 %v224_v41, %v223_v33  ;;  %v207_v50 = vadd.f32 %v206_v42, %v205_v34  ;;  %v219_v51 = vadd.f32 %v218_v43, %v217_v35  ;;  %v657_v34 = vld [vmem:[%s974_s4] ss:$0 sm:$0xff] }
  0xaa   :  { %v239_v52 = vadd.f32 %v238_v44, %v237_v36  ;;  %v251_v53 = vadd.f32 %v250_v45, %v249_v37  ;;  %v233_v54 = vadd.f32 %v232_v46, %v231_v38  ;;  %v245_v55 = vadd.f32 %v244_v47, %v243_v39 }
  0xab   :  { %v214_v56 = vrot.slane %v213_v48, 1  ;;  %v226_v57 = vrot.slane %v225_v49, 1  ;;  %v208_v58 = vrot.slane %v207_v50, 1  ;;  %v220_v59 = vrot.slane %v219_v51, 1 }
  0xac   :  { %v257_v60 = vmul.f32 0.125, %v239_v52  ;;  %v259_v61 = vmul.f32 0.125, %v251_v53  ;;  %v256_v62 = vmul.f32 0.125, %v233_v54  ;;  %v258_v63 = vmul.f32 0.125, %v245_v55 }
  0xad   :  { %v215_v0 = vadd.f32 %v214_v56, %v213_v48  ;;  %v227_v1 = vadd.f32 %v226_v57, %v225_v49  ;;  %v209_v2 = vadd.f32 %v208_v58, %v207_v50  ;;  %v221_v3 = vadd.f32 %v220_v59, %v219_v51 }
  0xae   :  { %v265_v4 = vpack.c.bf16 %v257_v60, %v257_v60  ;;  %v267_v5 = vpack.c.bf16 %v259_v61, %v259_v61  ;;  %v264_v6 = vpack.c.bf16 %v256_v62, %v256_v62  ;;  %v266_v7 = vpack.c.bf16 %v258_v63, %v258_v63 }
  0xaf   :  { %v253_v8 = vmul.f32 0.125, %v215_v0  ;;  %v255_v13 = vmul.f32 0.125, %v227_v1  ;;  %v252_v14 = vmul.f32 0.125, %v209_v2  ;;  %v254_v15 = vmul.f32 0.125, %v221_v3 }
  0xb0   :  { %v352_v9 = vunpack.c.l.b16 %v265_v4  ;;  %v354_v10 = vunpack.c.l.b16 %v267_v5  ;;  %v351_v11 = vunpack.c.l.b16 %v264_v6  ;;  %v353_v12 = vunpack.c.l.b16 %v266_v7 }
  0xb1   :  { %v261_v16 = vpack.c.bf16 %v253_v8, %v253_v8  ;;  %v263_v18 = vpack.c.bf16 %v255_v13, %v255_v13  ;;  %v260_v22 = vpack.c.bf16 %v252_v14, %v252_v14  ;;  %v262_v23 = vpack.c.bf16 %v254_v15, %v254_v15 }
  0xb3   :  { %v348_v24 = vunpack.c.l.b16 %v261_v16  ;;  %v350_v25 = vunpack.c.l.b16 %v263_v18  ;;  %v347_v26 = vunpack.c.l.b16 %v260_v22  ;;  %v349_v27 = vunpack.c.l.b16 %v262_v23 }
  0xb5   :  { %v357_v28 = vsel %vm355_vm0, %v352_v9, %v348_v24  ;;  %v359_v29 = vsel %vm355_vm0, %v354_v10, %v350_v25  ;;  %v356_v30 = vsel %vm355_vm0, %v351_v11, %v347_v26  ;;  %v358_v31 = vsel %vm355_vm0, %v353_v12, %v349_v27 }
  0xb6   :  { %v361_v17 = vpack.c.b16 %v357_v28, %v357_v28  ;;  %v363_v19 = vpack.c.b16 %v359_v29, %v359_v29  ;;  %v360_v20 = vpack.c.b16 %v356_v30, %v356_v30  ;;  %v362_v21 = vpack.c.b16 %v358_v31, %v358_v31 }
  0xb8   :  { %592 = vmatprep.mubr.bf16.mxu0 %v361_v17  ;;  %632 = vmatprep.mubr.bf16.mxu1 %v363_v19 }
  0xb9   :  { %593 = vmatmul.mubr.bf16.vlgmr.msra.gmra.mxu0 %v360_v20  ;;  %633 = vmatmul.mubr.bf16.vlgmr.msra.gmra.mxu1 %v362_v21 }
 0x179   :  { %v706_v32 = vpop.f32.mrf.mxu0  ;;  %v728_v33 = vpop.f32.mrf.mxu1 }
 0x17b   :  { %v707_v35 = vpop.f32.mrf.mxu0  ;;  %v729_v36 = vpop.f32.mrf.mxu1 }
 0x17c   :  { %v708_v37 = vadd.f32 %v707_v35, %v706_v32  ;;  %v730_v41 = vadd.f32 %v729_v36, %v728_v33 }
 0x17d   :  { %v709_v38 = vpop.f32.mrf.mxu0  ;;  %v731_v39 = vpop.f32.mrf.mxu1 }
 0x17e   :  { %v595_v40 = vadd.f32 %v708_v37, %v657_v34 }
 0x17f   :  { %v710_v42 = vpop.f32.mrf.mxu0  ;;  %v732_v43 = vpop.f32.mrf.mxu1 }
 0x180   :  { %v635_v44 = vadd.f32 %v730_v41, %v595_v40 }
 0x182   :  { %640 = vst [vmem:[#allocation2] sm:$0x3] %v635_v44 }
 0x183   :  { %778 = shalt.err (!%p775_p4)
}
 0x184   :  { %650 = dma.vmem_to_hbm [thread:$0]  %s648_s11, 32, %s975_s5, [#allocation3]  }
 0x185   :  { %787 = dma.done.wait [#allocation3], 32  }
 0x186   :  { %788 = vsyncadd [#allocation3], 4294967264 }
 0x187   :  { %654 = vsyncpa [#allocation3], 1 }

</bundles_post_ra>
